<compile_context>
chip_gen: v5e
topology: v5e:2x2
jax: 0.10.0
libtpu: 0.0.40
codegen_flags: <defaults>
</compile_context>

<pallas_src>
import functools

import jax
import jax.numpy as jnp
import numpy as np
from jax import lax
from jax.experimental import pallas as pl
from jax.experimental.pallas import tpu as pltpu


def _mf_score_kernel(uid_ref, iid_ref, tbl_ref, o_ref, *, emb_dim):
    """score[0, b] = sum_e user_emb[uid[b], e] * item_emb[iid[b], e].

    uid_ref : (1, Bp) int32 — user row indices (batch on the 128-lane axis).
    iid_ref : (1, Bp) int32 — item row indices, pre-offset by n_users.
    tbl_ref : (2E, n_users + n_items) f32 block-diagonal combined table:
                rows 0:E,  cols 0:n_users  = user_emb.T
                rows E:2E, cols n_users:   = item_emb.T
    o_ref   : (1, Bp) f32 lane-dense score slab (written once, unmasked).
    """
    n_rows = tbl_ref.shape[1]
    bp = uid_ref.shape[1]

    uid = uid_ref[...]                                              # (1, Bp)
    iid = iid_ref[...]                                              # (1, Bp)

    # Stacked one-hot: column b has a 1 at row uid[b] (user block) and a 1 at
    # row n_users + iid[b] (item block). The two can never collide because the
    # item indices are pre-offset past n_users.
    rows = lax.broadcasted_iota(jnp.int32, (n_rows, bp), 0)         # (n_rows, Bp)
    oh = jnp.logical_or(rows == uid, rows == iid).astype(tbl_ref.dtype)

    # Single fused MXU gather: (2E, n_rows) @ (n_rows, Bp) -> (2E, Bp).
    # precision=HIGHEST pins the full-precision f32 multi-pass path so the
    # one-hot matmul is an exact row select of the f32 table.
    gathered = jnp.dot(
        tbl_ref[...], oh,
        preferred_element_type=jnp.float32,
        precision=lax.Precision.HIGHEST,
    )                                                               # (2E, Bp)

    u_g = gathered[:emb_dim, :]                                     # (E, Bp)
    i_g = gathered[emb_dim:, :]                                     # (E, Bp)

    # Dot product over the embedding axis: sublane reduce on the (idle) XLU.
    o_ref[...] = jnp.sum(u_g * i_g, axis=0, keepdims=True)          # (1, Bp)


def make_combined_table(user_emb, item_emb):
    """One-time parameter preprocessing (hoisted out of the per-call path)."""
    n_users, emb_dim = user_emb.shape
    n_items, emb_dim_i = item_emb.shape
    assert emb_dim == emb_dim_i
    tbl = jnp.zeros((2 * emb_dim, n_users + n_items), jnp.float32)
    tbl = tbl.at[:emb_dim, :n_users].set(user_emb.astype(jnp.float32).T)
    tbl = tbl.at[emb_dim:, n_users:].set(item_emb.astype(jnp.float32).T)
    return tbl


@functools.partial(jax.jit, static_argnames=("n_users",))
def mf_scores(combined_tbl, user_indices, item_indices, *, n_users):
    """Pallas equivalent of (user_emb[u] * item_emb[i]).sum(-1) -> (B,) f32."""
    two_e, n_rows = combined_tbl.shape
    emb_dim = two_e // 2
    b = user_indices.shape[0]

    # Pad the batch to a full 128-lane multiple (pad with valid index 0 /
    # first item row); padding lanes are sliced off after the call.
    bp = max(128, ((b + 127) // 128) * 128)
    uid = jnp.zeros((1, bp), jnp.int32).at[0, :b].set(
        user_indices.astype(jnp.int32))
    iid = jnp.full((1, bp), n_users, jnp.int32).at[0, :b].set(
        item_indices.astype(jnp.int32) + n_users)

    cost = pl.CostEstimate(
        flops=2 * bp * two_e * n_rows + 3 * bp * emb_dim,
        transcendentals=0,
        bytes_accessed=two_e * n_rows * 4 + 2 * bp * 4 + bp * 4,
    )

    vmem = pltpu.MemorySpace.VMEM
    out = pl.pallas_call(
        functools.partial(_mf_score_kernel, emb_dim=emb_dim),
        out_shape=jax.ShapeDtypeStruct((1, bp), jnp.float32),
        in_specs=[
            pl.BlockSpec(memory_space=vmem),   # uid (1, Bp)
            pl.BlockSpec(memory_space=vmem),   # iid (1, Bp), pre-offset
            pl.BlockSpec(memory_space=vmem),   # combined table (2E, n_rows)
        ],
        out_specs=pl.BlockSpec(memory_space=vmem),
        cost_estimate=cost,
    )(uid, iid, combined_tbl)

    # TODO(synk): production-size tables: switch to HBM-resident tables
    # (pl.BlockSpec(memory_space=pl.ANY)) + PrefetchScalarGridSpec row-gather
    # DMA instead of the one-hot matmul; set vmem_limit_bytes explicitly
    # (v5e scoped default 16 MiB) and cross over earlier on v7x (64 MiB VMEM);
    # for B >> 1k add a batch grid with dimension_semantics=("parallel",) to
    # use both v7x TensorCores.
    return out[0, :b]


if __name__ == "__main__":
    # Deterministic "checkpoint": same shapes torch.nn.Embedding would create.
    n_users, n_items, embedding_size = 64, 50, 32
    batch = 16

    key = jax.random.PRNGKey(0)
    k_u, k_i, k_ui, k_ii = jax.random.split(key, 4)

    user_emb = jax.random.normal(k_u, (n_users, embedding_size), dtype=jnp.float32)
    item_emb = jax.random.normal(k_i, (n_items, embedding_size), dtype=jnp.float32)

    user_indices = jax.random.randint(k_ui, (batch,), 0, n_users, dtype=jnp.int32)
    item_indices = jax.random.randint(k_ii, (batch,), 0, n_items, dtype=jnp.int32)

    # One-time parameter preprocessing (kept out of the scoring call path).
    combined_tbl = jax.block_until_ready(make_combined_table(user_emb, item_emb))

    scores = mf_scores(combined_tbl, user_indices, item_indices, n_users=n_users)
    scores = jax.block_until_ready(scores)

    # Pure-JAX reference (same math as the PyTorch forward).
    ref = jnp.sum(user_emb[user_indices] * item_emb[item_indices], axis=-1)
    np.testing.assert_allclose(np.asarray(scores), np.asarray(ref),
                               rtol=1e-5, atol=1e-5)

    print("KERNEL_OK")
</pallas_src>

<mosaic_0001>
module attributes {stable_mosaic.version = 11 : i64} {
  func.func @_mf_score_kernel(%arg0: memref<1x128xi32, #tpu.memory_space<vmem>>, %arg1: memref<1x128xi32, #tpu.memory_space<vmem>>, %arg2: memref<64x114xf32, #tpu.memory_space<vmem>>, %arg3: memref<1x128xf32, #tpu.memory_space<vmem>>) attributes {dimension_semantics = [], scalar_prefetch = 0 : i64, scratch_operands = 0 : i64, tpu.core_type = #tpu.core_type<tc>} {
    %c0 = arith.constant 0 : index
    %c0_0 = arith.constant 0 : index
    %0 = vector.load %arg0[%c0, %c0_0] : memref<1x128xi32, #tpu.memory_space<vmem>>, vector<1x128xi32>
    %c0_1 = arith.constant 0 : index
    %c0_2 = arith.constant 0 : index
    %1 = vector.load %arg1[%c0_1, %c0_2] : memref<1x128xi32, #tpu.memory_space<vmem>>, vector<1x128xi32>
    %2 = tpu.iota {dimensions = array<i32: 0>} : vector<114x128xi32>
    %3 = vector.broadcast %0 : vector<1x128xi32> to vector<114x128xi32>
    %4 = arith.cmpi eq, %2, %3 : vector<114x128xi32>
    %5 = vector.broadcast %1 : vector<1x128xi32> to vector<114x128xi32>
    %6 = arith.cmpi eq, %2, %5 : vector<114x128xi32>
    %7 = arith.ori %4, %6 : vector<114x128xi1>
    %8 = arith.extui %7 : vector<114x128xi1> to vector<114x128xi32>
    %9 = arith.sitofp %8 : vector<114x128xi32> to vector<114x128xf32>
    %c0_3 = arith.constant 0 : index
    %c0_4 = arith.constant 0 : index
    %10 = vector.load %arg2[%c0_3, %c0_4] : memref<64x114xf32, #tpu.memory_space<vmem>>, vector<64x114xf32>
    %cst = arith.constant dense<0.000000e+00> : vector<64x128xf32>
    %11 = tpu.matmul %10, %9, %cst {dimension_numbers = #tpu.dot_dimension_numbers<[1], [0], [0], [1], [0, 0, 1, 1], [], []>, precision = #tpu.contract_precision<fp32>} : vector<64x114xf32>, vector<114x128xf32>, vector<64x128xf32> -> vector<64x128xf32>
    %12 = vector.extract_strided_slice %11 {offsets = [0, 0], sizes = [32, 128], strides = [1, 1]} : vector<64x128xf32> to vector<32x128xf32>
    %13 = vector.extract_strided_slice %11 {offsets = [32, 0], sizes = [32, 128], strides = [1, 1]} : vector<64x128xf32> to vector<32x128xf32>
    %14 = arith.mulf %12, %13 : vector<32x128xf32>
    %cst_5 = arith.constant dense<0.000000e+00> : vector<128xf32>
    %15 = vector.multi_reduction <add>, %14, %cst_5 [0] : vector<32x128xf32> to vector<128xf32>
    %16 = vector.shape_cast %15 : vector<128xf32> to vector<1x128xf32>
    %c0_6 = arith.constant 0 : index
    %c0_7 = arith.constant 0 : index
    %17 = vector.load %arg3[%c0_6, %c0_7] : memref<1x128xf32, #tpu.memory_space<vmem>>, vector<1x128xf32>
    tpu.vector_store %arg3[%c0_6, %c0_7], %16 {strides = array<i32>} : memref<1x128xf32, #tpu.memory_space<vmem>>, vector<1x128xf32>,
    return
  }
}

</mosaic_0001>

<bundles_post_ra>
// kernel: mf_scores.1
= control target key start
LH: loop header
LB: loop body
LE: loop exit
PB: predicated region body
PF: predicated region fallthrough
CT: control target
= control target key end

     0   :  { %8 = vsyncpa [#allocation3], 0  ;;  %s849_s15 = smov [#allocation2]   ;;  %s850_s17 = smov 128   ;;  %s1559_s0 = inlined_call_operand.vmem [shape: s32[1,128], index: 0, kind: input, shape index: {}]   ;;  %s1560_s1 = inlined_call_operand.vmem [shape: s32[1,128], index: 1, kind: input, shape index: {}]   ;;  %s1561_s2 = inlined_call_operand.hbm [shape: f32[64,114], index: 2, kind: input, shape index: {}]   ;;  %s1562_s3 = inlined_call_operand.vmem [shape: f32[1,128], index: 3, kind: output, shape index: {}]  }
   0x1   :  { %s17_s14 = sshll.u32 %s1561_s2, 4  ;;  %s19_s16 = sshll.u32 %s849_s15, 4  ;;  %s18_s14 = int_to_ptr.hbm [resolvable:$true] %s17_s14  ;;  %s20_s16 = int_to_ptr.vmem [resolvable:$true] %s19_s16 }
   0x2   :  { %s851_s18 = smov 8  }
   0x3   :  { %25 = dma.hbm_to_vmem [thread:$0]  %s18_s14, 1024, %s20_s16, [#allocation3], %s850_s17, %s850_s17, %s851_s18  }
   0x4   :  { %847 = dma.done.wait [#allocation3], 1024  }
   0x5   :  { %848 = vsyncadd [#allocation3], 4294966272  ;;  %v32_v0 = vlaneseq  ;;  %vm1563_vm0 = vcmask 1041408   ;;  %v898_v12 = vld [vmem:[%s1559_s0] ss:$0 sm:$0xff]  ;;  %v852_v18 = vmov 0.0  }
   0x6   :  { %v903_v13 = vld [vmem:[%s1560_s1] ss:$0 sm:$0xff]  ;;  %v853_v28 = vmov 1.0   ;;  %v1584_v37 = vmov 0 }
   0x7   :  { %v877_v1 = vshrl.u32 %v32_v0, 7  ;;  %v129_v0 = vld [vmem:[#allocation2 + $0x20] sm:$0xff] }
   0x9   :  { %v47_v2 = vadd.s32 112, %v877_v1  ;;  %v46_v3 = vadd.s32 104, %v877_v1  ;;  %v45_v4 = vadd.s32 96, %v877_v1  ;;  %v44_v5 = vadd.s32 88, %v877_v1 }
   0xa   :  { %v43_v6 = vadd.s32 80, %v877_v1  ;;  %v42_v7 = vadd.s32 72, %v877_v1  ;;  %v41_v8 = vadd.s32 64, %v877_v1  ;;  %v887_v9 = vadd.s32 56, %v877_v1 }
   0xb   :  { %v890_v10 = vadd.s32 48, %v877_v1  ;;  %v893_v11 = vadd.s32 40, %v877_v1  ;;  %v906_v14 = vadd.s32 32, %v877_v1  ;;  %v909_v15 = vadd.s32 24, %v877_v1 }
   0xc   :  { %v912_v16 = vadd.s32 16, %v877_v1  ;;  %v915_v17 = vadd.s32 8, %v877_v1  ;;  %vm63_vm1 = vcmp.eq.s32.totalorder %v47_v2, %v898_v12  ;;  %vm62_vm2 = vcmp.eq.s32.totalorder %v46_v3, %v898_v12 }
   0xd   :  { %vm61_vm3 = vcmp.eq.s32.totalorder %v45_v4, %v898_v12  ;;  %vm60_vm4 = vcmp.eq.s32.totalorder %v44_v5, %v898_v12  ;;  %vm79_vm5 = vcmp.eq.s32.totalorder %v47_v2, %v903_v13  ;;  %vm78_vm6 = vcmp.eq.s32.totalorder %v46_v3, %v903_v13 }
   0xe   :  { %vm77_vm7 = vcmp.eq.s32.totalorder %v45_v4, %v903_v13  ;;  %vm76_vm8 = vcmp.eq.s32.totalorder %v44_v5, %v903_v13  ;;  %vm94_vm9 = vmor %vm63_vm1, %vm79_vm5  ;;  %vm59_vm10 = vcmp.eq.s32.totalorder %v43_v6, %v898_v12  ;;  %vm75_vm11 = vcmp.eq.s32.totalorder %v43_v6, %v903_v13 }
   0xf   :  { %vm74_vm13 = vcmp.eq.s32.totalorder %v42_v7, %v903_v13  ;;  %v930_v19 = vsel %vm94_vm9, 1.0, %v852_v18  ;;  %vm932_vm14 = vmor %vm62_vm2, %vm78_vm6  ;;  %vm57_vm15 = vcmp.eq.s32.totalorder %v41_v8, %v898_v12  ;;  %vm73_vm1 = vcmp.eq.s32.totalorder %v41_v8, %v903_v13 }
  0x10   :  { %vm56_vm5 = vcmp.eq.s32.totalorder %v887_v9, %v898_v12  ;;  %786 = vmatpush.msk.msra.mxu2 %vm1563_vm0, %v930_v19  ;;  %vm944_vm12 = vmor %vm61_vm3, %vm77_vm7  ;;  %v160_v22 = vsel %vm1563_vm0, %v930_v19, 0  ;;  %v739_v23 = vsel %vm932_vm14, 1.0, %v852_v18  ;;  %vm72_vm2 = vcmp.eq.s32.totalorder %v887_v9, %v903_v13  ;;  %741 = vmatpush.msk.msra.mxu0 %vm1563_vm0, %v930_v19 }
  0x11   :  { %vm55_vm6 = vcmp.eq.s32.totalorder %v890_v10, %v898_v12  ;;  %vm963_vm3 = vmor %vm60_vm4, %vm76_vm8  ;;  %v967_v25 = vsub.f32 %v160_v22, %v160_v22  ;;  %v969_v26 = vsub.f32 %v739_v23, %v739_v23  ;;  %v738_v27 = vsel %vm944_vm12, 1.0, %v852_v18 }
  0x12   :  { %vm71_vm7 = vcmp.eq.s32.totalorder %v890_v10, %v903_v13  ;;  %787 = vmatpush.msk.msra.mxu2 %vm932_vm14, %v853_v28  ;;  %vm983_vm4 = vmor %vm59_vm10, %vm75_vm11  ;;  %v987_v30 = vsub.f32 %v738_v27, %v738_v27  ;;  %v737_v31 = vsel %vm963_vm3, 1.0, %v852_v18  ;;  %vm54_vm8 = vcmp.eq.s32.totalorder %v893_v11, %v898_v12  ;;  %742 = vmatpush.msk.msra.mxu0 %vm932_vm14, %v853_v28 }
  0x13   :  { %vm70_vm9 = vcmp.eq.s32.totalorder %v893_v11, %v903_v13  ;;  %v261_v32 = vand.u32 4294901760, %v967_v25  ;;  %vm1581_vm10 = vcmp.eq.s32.totalorder %v42_v7, %v898_v12  ;;  %v267_v34 = vand.u32 4294901760, %v969_v26 }
  0x14   :  { %vm1004_vm11 = vmor %vm1581_vm10, %vm74_vm13  ;;  %v1009_v35 = vsub.f32 %v737_v31, %v737_v31  ;;  %v736_v36 = vsel %vm983_vm4, 1.0, %v852_v18  ;;  %788 = vmatpush.msk.msra.mxu2 %vm944_vm12, %v853_v28  ;;  %v273_v38 = vand.u32 4294901760, %v987_v30  ;;  %vm53_vm10 = vcmp.eq.s32.totalorder %v906_v14, %v898_v12  ;;  %743 = vmatpush.msk.msra.mxu0 %vm944_vm12, %v853_v28 }
  0x15   :  { %vm1021_vm13 = vmor %vm57_vm15, %vm73_vm1  ;;  %v1026_v39 = vsub.f32 %v736_v36, %v736_v36  ;;  %v735_v40 = vsel %vm1004_vm11, 1.0, %v852_v18  ;;  %v262_v41 = vsub.f32 %v967_v25, %v261_v32  ;;  %v268_v42 = vsub.f32 %v969_v26, %v267_v34 }
  0x16   :  { %v1585_v37 = vsel %vm1021_vm13, 4294967295, %v1584_v37  ;;  %v279_v43 = vand.u32 4294901760, %v1009_v35  ;;  %v1043_v44 = vsub.f32 %v735_v40, %v735_v40  ;;  %789 = vmatpush.msk.msra.mxu2 %vm963_vm3, %v853_v28  ;;  %v274_v45 = vsub.f32 %v987_v30, %v273_v38  ;;  %vm1057_vm15 = vmor %vm56_vm5, %vm72_vm2  ;;  %744 = vmatpush.msk.msra.mxu0 %vm963_vm3, %v853_v28 }
  0x17   :  { %v285_v47 = vand.u32 4294901760, %v1026_v39  ;;  %vm69_vm1 = vcmp.eq.s32.totalorder %v906_v14, %v903_v13  ;;  %v734_v48 = vsel %vm1021_vm13, 1.0, %v852_v18  ;;  %v263_v49 = vand.u32 4294901760, %v262_v41  ;;  %vm1083_vm5 = vmor %vm55_vm6, %vm71_vm7 }
  0x18   :  { %v269_v50 = vand.u32 4294901760, %v268_v42  ;;  %v280_v51 = vsub.f32 %v1009_v35, %v279_v43  ;;  %v291_v52 = vand.u32 4294901760, %v1043_v44  ;;  %790 = vmatpush.msk.msra.mxu2 %vm983_vm4, %v853_v28  ;;  %v1090_v55 = vsub.f32 %v734_v48, %v734_v48  ;;  %745 = vmatpush.msk.msra.mxu0 %vm983_vm4, %v853_v28  ;;  %vm1103_vm6 = vmor %vm54_vm8, %vm70_vm9 }
  0x19   :  { %v286_v54 = vsub.f32 %v1026_v39, %v285_v47  ;;  %vm52_vm2 = vcmp.eq.s32.totalorder %v909_v15, %v898_v12  ;;  %801 = vmatpush.msra.mxu3 %v263_v49  ;;  %v275_v56 = vand.u32 4294901760, %v274_v45  ;;  %264 = vmatpush.msra.mxu1 %v263_v49  ;;  %vm68_vm7 = vcmp.eq.s32.totalorder %v909_v15, %v903_v13  ;;  %vm1126_vm8 = vmor %vm53_vm10, %vm69_vm1  ;;  %v130_v45 = vld [vmem:[#allocation2 + $0x28] sm:$0xff] }
  0x1a   :  { %v1110_v58 = vsub.f32 %v1043_v44, %v291_v52  ;;  %v733_v59 = vsel %vm1057_vm15, 1.0, %v852_v18  ;;  %791 = vmatpush.msk.msra.mxu2 %vm1004_vm11, %v853_v28  ;;  %v281_v60 = vand.u32 4294901760, %v280_v51  ;;  %v297_v62 = vand.u32 4294901760, %v1090_v55  ;;  %746 = vmatpush.msk.msra.mxu0 %vm1004_vm11, %v853_v28  ;;  %vm1141_vm10 = vmor %vm52_vm2, %vm68_vm7 }
  0x1b   :  { %v1131_v63 = vsub.f32 %v733_v59, %v733_v59  ;;  %vm51_vm9 = vcmp.eq.s32.totalorder %v912_v16, %v898_v12  ;;  %802 = vmatpush.msra.mxu3 %v269_v50  ;;  %v287_v2 = vand.u32 4294901760, %v286_v54  ;;  %270 = vmatpush.msra.mxu1 %v269_v50  ;;  %vm67_vm1 = vcmp.eq.s32.totalorder %v912_v16, %v903_v13 }
  0x1c   :  { %v732_v4 = vsel %vm1083_vm5, 1.0, %v852_v18  ;;  %vm50_vm0 = vcmp.eq.s32.totalorder %v915_v17, %v898_v12  ;;  %792 = vmatpush.msk.msra.mxu2 %vm1021_vm13, %v853_v28  ;;  %v298_v5 = vsub.f32 %v1090_v55, %v297_v62  ;;  %vm1159_vm2 = vmor %vm51_vm9, %vm67_vm1  ;;  %vm66_vm7 = vcmp.eq.s32.totalorder %v915_v17, %v903_v13  ;;  %747 = vmatpush.msk.msra.mxu0 %vm1021_vm13, %v853_v28 }
  0x1d   :  { %v303_v6 = vand.u32 4294901760, %v1131_v63  ;;  %v1163_v8 = vsub.f32 %v732_v4, %v732_v4  ;;  %803 = vmatpush.msra.mxu3 %v275_v56  ;;  %v293_v9 = vand.u32 4294901760, %v1110_v58  ;;  %276 = vmatpush.msra.mxu1 %v275_v56  ;;  %v731_v10 = vsel %vm1103_vm6, 1.0, %v852_v18  ;;  %vm1187_vm13 = vmor %vm50_vm0, %vm66_vm7 }
  0x1e   :  { %vm49_vm9 = vcmp.eq.s32.totalorder %v877_v1, %v898_v12  ;;  %vm1598_vm1 = vcmask 932864   ;;  %793 = vmatpush.msk.msra.mxu2 %vm1057_vm15, %v853_v28  ;;  %v1191_v22 = vsub.f32 %v731_v10, %v731_v10  ;;  %748 = vmatpush.msk.msra.mxu0 %vm1057_vm15, %v853_v28  ;;  %v730_v17 = vsel %vm1126_vm8, 1.0, %v852_v18 }
  0x1f   :  { %v147_v11 = vsel %vm1598_vm1, %v129_v0, 0  ;;  %v304_v14 = vsub.f32 %v1131_v63, %v303_v6  ;;  %v309_v15 = vand.u32 4294901760, %v1163_v8  ;;  %vm65_vm1 = vcmp.eq.s32.totalorder %v877_v1, %v903_v13  ;;  %804 = vmatpush.msra.mxu3 %v281_v60  ;;  %282 = vmatpush.msra.mxu1 %v281_v60 }
  0x20   :  { %v1198_v23 = vand.u32 4294901760, %v147_v11  ;;  %v729_v27 = vsel %vm1141_vm10, 1.0, %v852_v18  ;;  %v728_v31 = vsel %vm1159_vm2, 1.0, %v852_v18  ;;  %794 = vmatpush.msk.msra.mxu2 %vm1083_vm5, %v853_v28  ;;  %v299_v36 = vand.u32 4294901760, %v298_v5  ;;  %749 = vmatpush.msk.msra.mxu0 %vm1083_vm5, %v853_v28  ;;  %vm1243_vm0 = vmor %vm49_vm9, %vm65_vm1  ;;  %v131_v5 = vld [vmem:[#allocation2 + $0x30] sm:$0xff] }
  0x21   :  { %v310_v40 = vsub.f32 %v1163_v8, %v309_v15  ;;  %v315_v41 = vand.u32 4294901760, %v1191_v22  ;;  %v1216_v42 = vsub.f32 %v730_v17, %v730_v17  ;;  %805 = vmatpush.msra.mxu3 %v287_v2  ;;  %288 = vmatpush.msra.mxu1 %v287_v2  ;;  %v1224_v49 = vsub.f32 %v729_v27, %v729_v27  ;;  %v125_v27 = vld [vmem:[#allocation2] sm:$0xff] }
  0x22   :  { %v1222_v48 = vsub.f32 %v147_v11, %v1198_v23  ;;  %v1226_v50 = vsub.f32 %v728_v31, %v728_v31  ;;  %v727_v51 = vsel %vm1187_vm13, 1.0, %v852_v18  ;;  %795 = vmatpush.msk.msra.mxu2 %vm1103_vm6, %v853_v28  ;;  %v305_v54 = vand.u32 4294901760, %v304_v14  ;;  %750 = vmatpush.msk.msra.mxu0 %vm1103_vm6, %v853_v28  ;;  %v126_v31 = vld [vmem:[#allocation2 + $0x8] sm:$0xff] }
  0x23   :  { %v316_v56 = vsub.f32 %v1191_v22, %v315_v41  ;;  %v1570_v59 = vand.u32 4294901760, %v1216_v42  ;;  %806 = vmatpush.msra.mxu3 %v293_v9  ;;  %294 = vmatpush.msra.mxu1 %v293_v9  ;;  %v1568_v0 = vand.u32 4294901760, %v1224_v49  ;;  %v1253_v13 = vsub.f32 %v727_v51, %v727_v51 }
  0x24   :  { %v1566_v60 = vand.u32 4294901760, %v1222_v48  ;;  %vm1603_vm7 = vcmask 932864   ;;  %796 = vmatpush.msk.msra.mxu2 %vm1126_vm8, %v853_v28  ;;  %v1567_v2 = vand.u32 4294901760, %v1226_v50  ;;  %751 = vmatpush.msk.msra.mxu0 %vm1126_vm8, %v853_v28  ;;  %v311_v9 = vand.u32 4294901760, %v310_v40 }
  0x25   :  { %v150_v1 = vsel %vm1603_vm7, %v130_v45, 0  ;;  %v322_v12 = vsub.f32 %v1216_v42, %v1570_v59  ;;  %807 = vmatpush.msra.mxu3 %v299_v36  ;;  %300 = vmatpush.msra.mxu1 %v299_v36  ;;  %v726_v11 = vsel %vm1243_vm0, 1.0, %v852_v18  ;;  %v317_v36 = vand.u32 4294901760, %v316_v56  ;;  %vm1604_vm9 = vmmov %vm1603_vm7 }
  0x26   :  { %v1266_v4 = vand.u32 4294901760, %v150_v1  ;;  %v228_v10 = vsub.f32 %v1222_v48, %v1566_v60  ;;  %797 = vmatpush.msk.msra.mxu2 %vm1141_vm10, %v853_v28  ;;  %v1280_v17 = vsub.f32 %v726_v11, %v726_v11  ;;  %752 = vmatpush.msk.msra.mxu0 %vm1141_vm10, %v853_v28  ;;  %v328_v18 = vsub.f32 %v1224_v49, %v1568_v0  ;;  %vm1605_vm1 = vmmov %vm1603_vm7 }
  0x27   :  { %808 = vmatpush.msra.mxu3 %v305_v54  ;;  %306 = vmatpush.msra.mxu1 %v305_v54  ;;  %v1569_v40 = vand.u32 4294901760, %v1253_v13  ;;  %v153_v45 = vsel %vm1604_vm9, %v131_v5, 0  ;;  %v334_v11 = vsub.f32 %v1226_v50, %v1567_v2  ;;  %v135_v60 = vsel %vm1605_vm1, %v125_v27, 0  ;;  %vm1606_vm7 = vmmov %vm1605_vm1  ;;  %v132_v27 = vld [vmem:[#allocation2 + $0x38] sm:$0xff] }
  0x28   :  { %v1278_v14 = vsub.f32 %v150_v1, %v1266_v4  ;;  %798 = vmatpush.msk.msra.mxu2 %vm1159_vm2, %v853_v28  ;;  %v229_v51 = vand.u32 4294901760, %v228_v10  ;;  %v323_v1 = vand.u32 4294901760, %v322_v12  ;;  %753 = vmatpush.msk.msra.mxu0 %vm1159_vm2, %v853_v28  ;;  %v1572_v56 = vand.u32 4294901760, %v1280_v17  ;;  %vm1607_vm9 = vmmov %vm1605_vm1 }
  0x29   :  { %809 = vmatpush.msra.mxu3 %v311_v9  ;;  %312 = vmatpush.msra.mxu1 %v311_v9  ;;  %v1301_v5 = vand.u32 4294901760, %v153_v45  ;;  %v138_v12 = vsel %vm1606_vm7, %v126_v31, 0  ;;  %v1311_v10 = vand.u32 4294901760, %v135_v60  ;;  %v329_v9 = vand.u32 4294901760, %v328_v18 }
  0x2a   :  { %v1571_v54 = vand.u32 4294901760, %v1278_v14  ;;  %799 = vmatpush.msk.msra.mxu2 %vm1187_vm13, %v853_v28  ;;  %754 = vmatpush.msk.msra.mxu0 %vm1187_vm13, %v853_v28  ;;  %v340_v2 = vsub.f32 %v1253_v13, %v1569_v40  ;;  %v1325_v0 = vand.u32 4294901760, %v138_v12  ;;  %v346_v40 = vsub.f32 %v1280_v17, %v1572_v56 }
  0x2b   :  { %810 = vmatpush.msra.mxu3 %v317_v36  ;;  %318 = vmatpush.msra.mxu1 %v317_v36  ;;  %v1323_v31 = vsub.f32 %v135_v60, %v1311_v10  ;;  %v335_v36 = vand.u32 4294901760, %v334_v11  ;;  %v1334_v59 = vsub.f32 %v153_v45, %v1301_v5  ;;  %vm1608_vm7 = vcmask 1041408  }
  0x2c   :  { %800 = vmatpush.msk.msra.mxu2 %vm1243_vm0, %v853_v28  ;;  %755 = vmatpush.msk.msra.mxu0 %vm1243_vm0, %v853_v28  ;;  %v236_v18 = vsub.f32 %v1278_v14, %v1571_v54  ;;  %v341_v11 = vand.u32 4294901760, %v340_v2  ;;  %v1346_v54 = vsub.f32 %v138_v12, %v1325_v0  ;;  %v347_v56 = vand.u32 4294901760, %v346_v40 }
  0x2d   :  { %230 = vmatmul.f32.vlgmr.msra.gmra.mxu2 %v229_v51  ;;  %811 = vmatpush.msra.mxu3 %v323_v1  ;;  %v195_v60 = vand.u32 4294901760, %v1323_v31  ;;  %v156_v51 = vsel %vm1607_vm9, %v132_v27, 0  ;;  %v243_v27 = vand.u32 4294901760, %v1334_v59  ;;  %vm1609_vm9 = vmmov %vm1608_vm7  ;;  %v1612_v46 = vand.u32 4294901760, %v1224_v49 }
  0x2e   :  { %385 = vmatpush.msrb.mxu2 %v967_v25  ;;  %324 = vmatpush.msra.mxu1 %v323_v1  ;;  %v237_v1 = vand.u32 4294901760, %v236_v18  ;;  %v1351_v25 = vand.u32 4294901760, %v156_v51  ;;  %v203_v40 = vand.u32 4294901760, %v1346_v54  ;;  %v1615_v53 = vand.u32 4294901760, %v1280_v17 }
  0x2f   :  { %812 = vmatpush.msra.mxu3 %v329_v9  ;;  %553 = vmatpush.msrb.mxu0 %v261_v32  ;;  %v196_v45 = vsub.f32 %v1323_v31, %v195_v60  ;;  %v127_v32 = vld [vmem:[#allocation2 + $0x10] sm:$0xff] }
  0x30   :  { %388 = vmatpush.msrb.mxu2 %v969_v26  ;;  %330 = vmatpush.msra.mxu1 %v329_v9  ;;  %v244_v26 = vsub.f32 %v1334_v59, %v243_v27  ;;  %v141_v12 = vsel %vm1605_vm1, %v127_v32, 0 }
  0x31   :  { %813 = vmatpush.msra.mxu3 %v335_v36  ;;  %557 = vmatpush.msrb.mxu0 %v267_v34  ;;  %v197_v2 = vand.u32 4294901760, %v196_v45  ;;  %v1362_v34 = vsub.f32 %v156_v51, %v1351_v25 }
  0x32   :  { %391 = vmatpush.msrb.mxu2 %v987_v30  ;;  %336 = vmatpush.msra.mxu1 %v335_v36  ;;  %v204_v30 = vsub.f32 %v1346_v54, %v203_v40  ;;  %v245_v9 = vand.u32 4294901760, %v244_v26 }
  0x33   :  { %814 = vmatpush.msra.mxu3 %v341_v11  ;;  %561 = vmatpush.msrb.mxu0 %v273_v38  ;;  %v1373_v38 = vand.u32 4294901760, %v141_v12  ;;  %v251_v36 = vand.u32 4294901760, %v1362_v34 }
  0x34   :  { %394 = vmatpush.msrb.mxu2 %v1009_v35  ;;  %342 = vmatpush.msra.mxu1 %v341_v11  ;;  %v205_v18 = vand.u32 4294901760, %v204_v30 }
  0x35   :  { %238 = vmatmul.f32.gmra.mxu2 %v237_v1  ;;  %815 = vmatpush.msra.mxu3 %v347_v56  ;;  %v1393_v51 = vsub.f32 %v141_v12, %v1373_v38 }
  0x36   :  { %366 = vmatmul.f32.vlgmr.msra.gmra.mxu3 %v1198_v23  ;;  %397 = vmatpush.msrb.mxu2 %v1026_v39 }
  0x37   :  { %756 = vmatpush.msk.msrb.mxu3 %vm1608_vm7, %v930_v19  ;;  %348 = vmatpush.msra.mxu1 %v347_v56  ;;  %v128_v56 = vld [vmem:[#allocation2 + $0x18] sm:$0xff]  ;;  %v211_v20 = vand.u32 4294901760, %v1393_v51 }
  0x38   :  { %400 = vmatpush.msrb.mxu2 %v1043_v44  ;;  %198 = vmatmul.f32.vlgmr.msra.gmra.mxu0 %v197_v2  ;;  %v144_v35 = vsel %vm1605_vm1, %v128_v56, 0 }
  0x39   :  { %757 = vmatpush.msk.msrb.mxu3 %vm932_vm14, %v853_v28  ;;  %350 = vmatmul.f32.vlgmr.msra.gmra.mxu1 %v1311_v10  ;;  %v212_v21 = vsub.f32 %v1393_v51, %v211_v20 }
  0x3a   :  { %403 = vmatpush.msrb.mxu2 %v1090_v55  ;;  %771 = vmatpush.msk.msrb.mxu1 %vm1609_vm9, %v930_v19  ;;  %v252_v19 = vsub.f32 %v1362_v34, %v251_v36  ;;  %v1617_v55 = vand.u32 4294901760, %v1278_v14 }
  0x3b   :  { %758 = vmatpush.msk.msrb.mxu3 %vm944_vm12, %v853_v28  ;;  %565 = vmatpush.msrb.mxu0 %v279_v43  ;;  %v1412_v43 = vand.u32 4294901760, %v144_v35  ;;  %v213_v24 = vand.u32 4294901760, %v212_v21 }
  0x3c   :  { %406 = vmatpush.msrb.mxu2 %v1131_v63  ;;  %772 = vmatpush.msk.msrb.mxu1 %vm932_vm14, %v853_v28  ;;  %v253_v11 = vand.u32 4294901760, %v252_v19 }
  0x3d   :  { %246 = vmatmul.f32.gmra.mxu2 %v245_v9  ;;  %759 = vmatpush.msk.msrb.mxu3 %vm963_vm3, %v853_v28  ;;  %v218_v39 = vsub.f32 %v144_v35, %v1412_v43 }
  0x3e   :  { %370 = vmatmul.f32.gmra.mxu3 %v1266_v4  ;;  %409 = vmatpush.msrb.mxu2 %v1163_v8 }
  0x3f   :  { %760 = vmatpush.msk.msrb.mxu3 %vm983_vm4, %v853_v28  ;;  %773 = vmatpush.msk.msrb.mxu1 %vm944_vm12, %v853_v28  ;;  %vm1610_vm12 = vnez %v1585_v37  ;;  %v219_v44 = vand.u32 4294901760, %v218_v39  ;;  %v1611_v37 = vand.u32 4294901760, %v1216_v42 }
  0x40   :  { %412 = vmatpush.msrb.mxu2 %v1191_v22  ;;  %206 = vmatmul.f32.gmra.mxu0 %v205_v18 }
  0x41   :  { %761 = vmatpush.msk.msrb.mxu3 %vm1004_vm11, %v853_v28  ;;  %354 = vmatmul.f32.gmra.mxu1 %v1325_v0  ;;  %v220_v29 = vsub.f32 %v218_v39, %v219_v44 }
  0x42   :  { %415 = vmatpush.msrb.mxu2 %v1216_v42  ;;  %569 = vmatpush.msrb.mxu0 %v285_v47  ;;  %v1613_v47 = vand.u32 4294901760, %v1226_v50 }
  0x43   :  { %762 = vmatpush.msk.msrb.mxu3 %vm1610_vm12, %v853_v28  ;;  %774 = vmatpush.msk.msrb.mxu1 %vm963_vm3, %v853_v28  ;;  %v221_v33 = vand.u32 4294901760, %v220_v29 }
  0x44   :  { %418 = vmatpush.msrb.mxu2 %v1224_v49  ;;  %573 = vmatpush.msrb.mxu0 %v291_v52  ;;  %v1614_v52 = vand.u32 4294901760, %v1253_v13 }
  0x45   :  { %254 = vmatmul.f32.gmra.mxu2 %v253_v11  ;;  %763 = vmatpush.msk.msrb.mxu3 %vm1057_vm15, %v853_v28 }
  0x46   :  { %374 = vmatmul.f32.gmra.mxu3 %v1301_v5  ;;  %421 = vmatpush.msrb.mxu2 %v1226_v50 }
  0x47   :  { %764 = vmatpush.msk.msrb.mxu3 %vm1083_vm5, %v853_v28  ;;  %775 = vmatpush.msk.msrb.mxu1 %vm983_vm4, %v853_v28 }
  0x48   :  { %424 = vmatpush.msrb.mxu2 %v1253_v13  ;;  %577 = vmatpush.msrb.mxu0 %v297_v62 }
  0x49   :  { %765 = vmatpush.msk.msrb.mxu3 %vm1103_vm6, %v853_v28  ;;  %776 = vmatpush.msk.msrb.mxu1 %vm1004_vm11, %v853_v28 }
  0x4a   :  { %427 = vmatpush.msrb.mxu2 %v1280_v17  ;;  %581 = vmatpush.msrb.mxu0 %v303_v6 }
  0x4b   :  { %766 = vmatpush.msk.msrb.mxu3 %vm1126_vm8, %v853_v28  ;;  %777 = vmatpush.msk.msrb.mxu1 %vm1610_vm12, %v853_v28 }
  0x4c   :  { %214 = vmatmul.f32.gmra.mxu0 %v213_v24  ;;  %358 = vmatmul.f32.gmra.mxu1 %v1373_v38 }
  0x4d   :  { %430 = vmatmul.f32.vlgmr.msrb.gmra.mxu2 %v1323_v31  ;;  %767 = vmatpush.msk.msrb.mxu3 %vm1141_vm10, %v853_v28 }
  0x4e   :  { %378 = vmatmul.f32.gmra.mxu3 %v1351_v25  ;;  %778 = vmatpush.msk.msrb.mxu1 %vm1057_vm15, %v853_v28 }
  0x4f   :  { %768 = vmatpush.msk.msrb.mxu3 %vm1159_vm2, %v853_v28  ;;  %585 = vmatpush.msrb.mxu0 %v309_v15 }
  0x50   :  { %779 = vmatpush.msk.msrb.mxu1 %vm1083_vm5, %v853_v28 }
  0x51   :  { %769 = vmatpush.msk.msrb.mxu3 %vm1187_vm13, %v853_v28  ;;  %589 = vmatpush.msrb.mxu0 %v315_v41 }
  0x52   :  { %780 = vmatpush.msk.msrb.mxu1 %vm1103_vm6, %v853_v28 }
  0x53   :  { %770 = vmatpush.msk.msrb.mxu3 %vm1243_vm0, %v853_v28  ;;  %593 = vmatpush.msrb.mxu0 %v1611_v37 }
  0x54   :  { %222 = vmatmul.f32.gmra.mxu0 %v221_v33  ;;  %362 = vmatmul.f32.gmra.mxu1 %v1412_v43 }
  0x55   :  { %435 = vmatmul.f32.gmra.mxu2 %v1346_v54  ;;  %597 = vmatpush.msrb.mxu0 %v1612_v46 }
  0x56   :  { %503 = vmatmul.f32.vlgmr.msrb.gmra.mxu3 %v195_v60  ;;  %781 = vmatpush.msk.msrb.mxu1 %vm1126_vm8, %v853_v28 }
  0x57   :  { %601 = vmatpush.msrb.mxu0 %v1613_v47 }
  0x58   :  { %782 = vmatpush.msk.msrb.mxu1 %vm1141_vm10, %v853_v28 }
  0x59   :  { %605 = vmatpush.msrb.mxu0 %v1614_v52 }
  0x5a   :  { %783 = vmatpush.msk.msrb.mxu1 %vm1159_vm2, %v853_v28 }
  0x5b   :  { %609 = vmatpush.msrb.mxu0 %v1615_v53 }
  0x5c   :  { %784 = vmatpush.msk.msrb.mxu1 %vm1187_vm13, %v853_v28  ;;  %611 = vmatmul.f32.vlgmr.msrb.gmra.mxu0 %v1311_v10 }
  0x5d   :  { %440 = vmatmul.f32.gmra.mxu2 %v1393_v51 }
  0x5e   :  { %509 = vmatmul.f32.gmra.mxu3 %v203_v40  ;;  %785 = vmatpush.msk.msrb.mxu1 %vm1243_vm0, %v853_v28  ;;  %v1616_v28 = vand.u32 4294901760, %v1222_v48 }
  0x5f   :  { %675 = vmatmul.f32.vlgmr.msrb.gmra.mxu1 %v1311_v10 }
  0x64   :  { %615 = vmatmul.f32.gmra.mxu0 %v1325_v0 }
  0x65   :  { %445 = vmatmul.f32.gmra.mxu2 %v218_v39 }
  0x66   :  { %515 = vmatmul.f32.gmra.mxu3 %v211_v20 }
  0x67   :  { %679 = vmatmul.f32.gmra.mxu1 %v1325_v0 }
  0x6c   :  { %619 = vmatmul.f32.gmra.mxu0 %v1373_v38 }
  0x6d   :  { %450 = vmatmul.f32.gmra.mxu2 %v1222_v48 }
  0x6e   :  { %521 = vmatmul.f32.gmra.mxu3 %v219_v44 }
  0x6f   :  { %683 = vmatmul.f32.gmra.mxu1 %v1373_v38 }
  0x74   :  { %623 = vmatmul.f32.gmra.mxu0 %v1412_v43 }
  0x75   :  { %455 = vmatmul.f32.gmra.mxu2 %v1278_v14 }
  0x76   :  { %527 = vmatmul.f32.gmra.mxu3 %v1616_v28 }
  0x77   :  { %687 = vmatmul.f32.gmra.mxu1 %v1412_v43 }
  0x7c   :  { %627 = vmatmul.f32.gmra.mxu0 %v1198_v23 }
  0x7d   :  { %460 = vmatmul.f32.gmra.mxu2 %v1334_v59 }
  0x7e   :  { %533 = vmatmul.f32.gmra.mxu3 %v1617_v55 }
  0x7f   :  { %691 = vmatmul.f32.gmra.mxu1 %v1198_v23 }
  0x84   :  { %631 = vmatmul.f32.gmra.mxu0 %v1266_v4 }
  0x85   :  { %465 = vmatmul.f32.gmra.mxu2 %v1362_v34 }
  0x86   :  { %539 = vmatmul.f32.gmra.mxu3 %v243_v27 }
  0x87   :  { %695 = vmatmul.f32.gmra.mxu1 %v1266_v4 }
  0x8c   :  { %635 = vmatmul.f32.gmra.mxu0 %v1301_v5 }
  0x8e   :  { %545 = vmatmul.f32.gmra.mxu3 %v251_v36 }
  0x8f   :  { %699 = vmatmul.f32.gmra.mxu1 %v1301_v5 }
  0x94   :  { %639 = vmatmul.f32.gmra.mxu0 %v1351_v25 }
  0x97   :  { %703 = vmatmul.f32.gmra.mxu1 %v1351_v25 }
  0xb0   :  { %v231_v57 = vpop.f32.mrf.mxu2 }
  0xb5   :  { %v199_v61 = vpop.f32.mrf.mxu0 }
  0xb6   :  { %v351_v62 = vpop.f32.mrf.mxu1 }
  0xb7   :  { %v352_v63 = vadd.f32 %v351_v62, %v199_v61 }
  0xb8   :  { %v239_v3 = vpop.f32.mrf.mxu2 }
  0xb9   :  { %v367_v6 = vpop.f32.mrf.mxu3 }
  0xba   :  { %v368_v7 = vadd.f32 %v367_v6, %v231_v57 }
  0xbd   :  { %v207_v8 = vpop.f32.mrf.mxu0 }
  0xbe   :  { %v355_v15 = vpop.f32.mrf.mxu1 }
  0xbf   :  { %v356_v16 = vadd.f32 %v355_v15, %v207_v8 }
  0xc0   :  { %v247_v22 = vpop.f32.mrf.mxu2 }
  0xc1   :  { %v371_v23 = vpop.f32.mrf.mxu3 }
  0xc2   :  { %v372_v41 = vadd.f32 %v371_v23, %v239_v3 }
  0xc8   :  { %v1553_v42 = vpop.f32.mrf.mxu2 }
  0xc9   :  { %v375_v48 = vpop.f32.mrf.mxu3  ;;  %v215_v49 = vpop.f32.mrf.mxu0 }
  0xca   :  { %v376_v50 = vadd.f32 %v375_v48, %v247_v22  ;;  %v359_v58 = vpop.f32.mrf.mxu1 }
  0xcb   :  { %v360_v33 = vadd.f32 %v359_v58, %v215_v49 }
  0xd0   :  { %v431_v59 = vpop.f32.mrf.mxu2 }
  0xd1   :  { %v379_v0 = vpop.f32.mrf.mxu3  ;;  %v223_v13 = vpop.f32.mrf.mxu0  ;;  %v432_v34 = vadd.f32 %v431_v59, %v352_v63 }
  0xd2   :  { %v363_v4 = vpop.f32.mrf.mxu1  ;;  %v380_v49 = vadd.f32 %v379_v0, %v1553_v42 }
  0xd8   :  { %v436_v14 = vpop.f32.mrf.mxu2 }
  0xd9   :  { %v504_v17 = vpop.f32.mrf.mxu3  ;;  %v612_v54 = vpop.f32.mrf.mxu0  ;;  %v437_v19 = vadd.f32 %v436_v14, %v356_v16 }
  0xda   :  { %v505_v30 = vadd.f32 %v504_v17, %v432_v34 }
  0xdc   :  { %v676_v5 = vpop.f32.mrf.mxu1  ;;  %v613_v18 = vadd.f32 %v612_v54, %v505_v30 }
  0xde   :  { %v677_v43 = vadd.f32 %v676_v5, %v613_v18 }
  0xe0   :  { %v441_v10 = vpop.f32.mrf.mxu2 }
  0xe1   :  { %v510_v31 = vpop.f32.mrf.mxu3  ;;  %v616_v60 = vpop.f32.mrf.mxu0  ;;  %v442_v52 = vadd.f32 %v441_v10, %v360_v33 }
  0xe2   :  { %v511_v11 = vadd.f32 %v510_v31, %v437_v19 }
  0xe4   :  { %v680_v45 = vpop.f32.mrf.mxu1  ;;  %v617_v37 = vadd.f32 %v616_v60, %v511_v11 }
  0xe6   :  { %v681_v55 = vadd.f32 %v680_v45, %v617_v37 }
  0xe8   :  { %v446_v1 = vpop.f32.mrf.mxu2 }
  0xe9   :  { %v516_v27 = vpop.f32.mrf.mxu3  ;;  %v620_v25 = vpop.f32.mrf.mxu0 }
  0xea   :  { %v517_v57 = vadd.f32 %v516_v27, %v442_v52 }
  0xec   :  { %v684_v32 = vpop.f32.mrf.mxu1  ;;  %v621_v8 = vadd.f32 %v620_v25, %v517_v57 }
  0xee   :  { %v685_v58 = vadd.f32 %v684_v32, %v621_v8 }
  0xf0   :  { %v451_v2 = vpop.f32.mrf.mxu2 }
  0xf1   :  { %v522_v40 = vpop.f32.mrf.mxu3  ;;  %v624_v26 = vpop.f32.mrf.mxu0  ;;  %v452_v38 = vadd.f32 %v451_v2, %v368_v7  ;;  %v364_v7 = vadd.f32 %v363_v4, %v223_v13 }
  0xf3   :  { %v447_v22 = vadd.f32 %v446_v1, %v364_v7 }
  0xf4   :  { %v688_v12 = vpop.f32.mrf.mxu1 }
  0xf5   :  { %v523_v59 = vadd.f32 %v522_v40, %v447_v22 }
  0xf7   :  { %v625_v10 = vadd.f32 %v624_v26, %v523_v59 }
  0xf8   :  { %v456_v9 = vpop.f32.mrf.mxu2 }
  0xf9   :  { %v528_v36 = vpop.f32.mrf.mxu3  ;;  %v628_v56 = vpop.f32.mrf.mxu0  ;;  %v457_v39 = vadd.f32 %v456_v9, %v372_v41  ;;  %v689_v45 = vadd.f32 %v688_v12, %v625_v10 }
  0xfa   :  { %v529_v51 = vadd.f32 %v528_v36, %v452_v38 }
  0xfc   :  { %v629_v35 = vadd.f32 %v628_v56, %v529_v51  ;;  %v692_v20 = vpop.f32.mrf.mxu1 }
  0xfe   :  { %v693_v21 = vadd.f32 %v692_v20, %v629_v35 }
 0x100   :  { %v707_v24 = vmul.f32 %v693_v21, %v677_v43  ;;  %v461_v47 = vpop.f32.mrf.mxu2 }
 0x101   :  { %v534_v44 = vpop.f32.mrf.mxu3  ;;  %v632_v29 = vpop.f32.mrf.mxu0  ;;  %v462_v62 = vadd.f32 %v461_v47, %v376_v50 }
 0x102   :  { %v535_v46 = vadd.f32 %v534_v44, %v457_v39 }
 0x104   :  { %v633_v53 = vadd.f32 %v632_v29, %v535_v46  ;;  %v696_v28 = vpop.f32.mrf.mxu1 }
 0x106   :  { %v697_v61 = vadd.f32 %v696_v28, %v633_v53 }
 0x108   :  { %v708_v63 = vmul.f32 %v697_v61, %v681_v55  ;;  %v466_v48 = vpop.f32.mrf.mxu2 }
 0x109   :  { %v540_v3 = vpop.f32.mrf.mxu3  ;;  %v636_v6 = vpop.f32.mrf.mxu0  ;;  %v467_v17 = vadd.f32 %v466_v48, %v380_v49 }
 0x10a   :  { %v711_v15 = vadd.f32 %v708_v63, %v707_v24  ;;  %v541_v16 = vadd.f32 %v540_v3, %v462_v62 }
 0x10c   :  { %v637_v23 = vadd.f32 %v636_v6, %v541_v16  ;;  %v700_v41 = vpop.f32.mrf.mxu1 }
 0x10e   :  { %v701_v14 = vadd.f32 %v700_v41, %v637_v23 }
 0x110   :  { %v709_v54 = vmul.f32 %v701_v14, %v685_v58 }
 0x111   :  { %v546_v5 = vpop.f32.mrf.mxu3  ;;  %v640_v50 = vpop.f32.mrf.mxu0 }
 0x112   :  { %v712_v31 = vadd.f32 %v711_v15, %v709_v54  ;;  %v547_v60 = vadd.f32 %v546_v5, %v467_v17 }
 0x114   :  { %v641_v13 = vadd.f32 %v640_v50, %v547_v60  ;;  %v704_v4 = vpop.f32.mrf.mxu1 }
 0x116   :  { %v705_v27 = vadd.f32 %v704_v4, %v641_v13 }
 0x118   :  { %v710_v1 = vmul.f32 %v705_v27, %v689_v45 }
 0x11a   :  { %v713_v25 = vadd.f32 %v712_v31, %v710_v1 }
 0x11c   :  { %v714_v2 = vrot.slane %v713_v25, 4 }
 0x11e   :  { %v715_v34 = vadd.f32 %v714_v2, %v713_v25 }
 0x120   :  { %v716_v30 = vrot.slane %v715_v34, 2 }
 0x122   :  { %v717_v42 = vadd.f32 %v716_v30, %v715_v34 }
 0x124   :  { %v718_v0 = vrot.slane %v717_v42, 1 }
 0x126   :  { %v719_v32 = vadd.f32 %v718_v0, %v717_v42 }
 0x128   :  { %720 = vst [vmem:[%s1562_s3] sm:$0x1] %v719_v32 }
 0x129   :  { %725 = vsyncpa [#allocation3], 1 }

</bundles_post_ra>
